<compile_context>
chip_gen: v7x
topology: tpu7x:2x2x1
jax: 0.10.0
libtpu: 0.0.40
codegen_flags: <defaults>
</compile_context>

<pallas_src>
import math

import jax
import jax.numpy as jnp
from jax.experimental import pallas as pl
from jax.experimental.pallas import tpu as pltpu

TM_FOLD_MAX = 4096        # max folded rows per grid step (= TM_FOLD_MAX*F original rows)
VMEM_BUDGET = 12 << 20    # per-step streamed bytes budget (double-buffered), under
                          # v5e's 16 MiB default scoped VMEM


def _choose_row_fold(output_dim, max_fold=32):
    """Smallest fold F with (F * output_dim) % 128 == 0 -> lane-dense stores."""
    f = 128 // math.gcd(128, output_dim)
    if f > max_fold:
        # Fallback for awkward output_dims: still correct, just not fully
        # lane-dense on the store side.
        f = max(1, min(max_fold, 128 // max(1, output_dim)))
    return max(1, f)


def fnn_kernel(x_ref, w_ref, b_ref, o_ref):
    # x_ref: (tm_fold, F*D)  activations in their original dtype (f32)
    # w_ref: (F*D, F*O)      block-diagonal weight (bf16 or f32)
    # b_ref: (1, F*O)        f32 bias, tiled F times
    # o_ref: (tm_fold, F*O)
    xv = x_ref[...].astype(w_ref.dtype)   # in-kernel cast: no extra HBM pass over x
    y = jnp.dot(xv, w_ref[...], preferred_element_type=jnp.float32)
    y = y + b_ref[...]
    # sigmoid(y) == 0.5 * tanh(0.5*y) + 0.5  (EUP slot, no VALU divide)
    o_ref[...] = (0.5 * jnp.tanh(0.5 * y) + 0.5).astype(o_ref.dtype)


def fnn_forward(x, weight, bias, *, use_bf16=True, out_dtype=None):
    """
    x:      (B, n_node, state_dim)
    weight: (output_dim, state_dim, 1)   -- PyTorch Conv1d weight layout
    bias:   (output_dim,)
    returns (B, n_node, output_dim)  in `out_dtype` (default: x.dtype)
    """
    B, N, D = x.shape
    O = weight.shape[0]
    out_dtype = x.dtype if out_dtype is None else jnp.dtype(out_dtype)

    F = _choose_row_fold(O)
    M = B * N
    m_fold = pl.cdiv(M, F)
    M_pad = m_fold * F

    # Rows x channels; pad only the <= F-1 row tail (no tile-granularity pad).
    x2d = x.reshape(M, D)
    if M_pad != M:
        x2d = jnp.pad(x2d, ((0, M_pad - M), (0, 0)))
    # Fold F consecutive rows into one lane-dense row (row-major reshape, free).
    x_fold = x2d.reshape(m_fold, F * D)

    # Block-diagonal weight: x_fold @ w_big == the F per-row matmuls laid out
    # contiguously along lanes -> lane-dense output block.
    w_t = jnp.squeeze(weight, axis=-1).T                          # (D, O)
    w_big = jnp.kron(jnp.eye(F, dtype=w_t.dtype), w_t)            # (F*D, F*O)
    b_big = jnp.tile(bias.astype(jnp.float32), F).reshape(1, F * O)
    if use_bf16:
        w_big = w_big.astype(jnp.bfloat16)   # activations cast per-tile in-kernel

    # --- tile size: amortize per-step overhead, stay inside the VMEM budget,
    #     and keep >= 2 grid steps when possible so both v7x TCs can stream.
    x_row_bytes = F * D * x_fold.dtype.itemsize
    o_row_bytes = F * O * out_dtype.itemsize
    bytes_per_fold_row = 2 * (x_row_bytes + o_row_bytes)          # double-buffered
    tm_cap = max(16, min(TM_FOLD_MAX, VMEM_BUDGET // max(1, bytes_per_fold_row)))

    if m_fold <= 16:
        tm_fold = m_fold                       # single full-array block (tiny inputs)
    else:
        tm_fold = min(tm_cap, pl.cdiv(m_fold, 2))      # >= 2 grid steps
        tm_fold = max(16, (tm_fold // 16) * 16)        # sublane-aligned; ragged tail OK
    grid_m = pl.cdiv(m_fold, tm_fold)

    cost = pl.CostEstimate(
        flops=2 * M_pad * D * O,
        transcendentals=M_pad * O,
        bytes_accessed=(x_fold.size * x_fold.dtype.itemsize
                        + w_big.size * w_big.dtype.itemsize
                        + b_big.size * b_big.dtype.itemsize
                        + m_fold * F * O * out_dtype.itemsize),
    )

    out = pl.pallas_call(
        fnn_kernel,
        out_shape=jax.ShapeDtypeStruct((m_fold, F * O), out_dtype),
        grid_spec=pltpu.PrefetchScalarGridSpec(
            num_scalar_prefetch=0,
            grid=(grid_m,),
            in_specs=[
                pl.BlockSpec((tm_fold, F * D), lambda i: (i, 0)),
                pl.BlockSpec((F * D, F * O), lambda i: (0, 0)),
                pl.BlockSpec((1, F * O), lambda i: (0, 0)),
            ],
            out_specs=pl.BlockSpec((tm_fold, F * O), lambda i: (i, 0)),
        ),
        compiler_params=pltpu.CompilerParams(
            dimension_semantics=("parallel",)),
        cost_estimate=cost,
    )(x_fold, w_big, b_big)

    y = out.reshape(M_pad, O)
    if M_pad != M:
        y = y[:M]
    return y.reshape(B, N, O)


if __name__ == "__main__":
    # Small, deterministic example consistent with the module's forward:
    # x: (batchSize, n_node, state_dim)
    B, N, STATE_DIM, OUTPUT_DIM = 2, 8, 32, 16

    key = jax.random.PRNGKey(0)
    kx, kw, kb = jax.random.split(key, 3)

    x = jax.random.normal(kx, (B, N, STATE_DIM), dtype=jnp.float32)
    # Conv1d(state_dim, output_dim, kernel_size=1) parameters
    weight = 0.02 * jax.random.normal(kw, (OUTPUT_DIM, STATE_DIM, 1), dtype=jnp.float32)
    bias = 0.02 * jax.random.normal(kb, (OUTPUT_DIM,), dtype=jnp.float32)

    # Reference in plain JAX (same math as the PyTorch forward).
    ref = jax.nn.sigmoid(
        jnp.einsum("bnc,oc->bno", x, jnp.squeeze(weight, -1)) + bias)

    # f32 path: matches the reference tightly.
    y32 = fnn_forward(x, weight, bias, use_bf16=False)
    jax.block_until_ready(y32)
    assert y32.shape == (B, N, OUTPUT_DIM)
    assert jnp.allclose(y32, ref, atol=1e-4, rtol=0)

    # bf16-matmul path (default): loose tolerance.
    y = fnn_forward(x, weight, bias, use_bf16=True)
    jax.block_until_ready(y)
    assert y.shape == (B, N, OUTPUT_DIM)
    assert jnp.allclose(y, ref, atol=5e-3, rtol=0)

    # bf16-matmul + bf16 output (halves writeback traffic): looser tolerance.
    ybf = fnn_forward(x, weight, bias, use_bf16=True, out_dtype=jnp.bfloat16)
    jax.block_until_ready(ybf)
    assert ybf.dtype == jnp.bfloat16
    assert jnp.allclose(ybf.astype(jnp.float32), ref, atol=1e-2, rtol=0)

    print("KERNEL_OK")
</pallas_src>

<mosaic_0001>
module attributes {stable_mosaic.version = 11 : i64} {
  func.func @fnn_kernel(%arg0: i32, %arg1: memref<2x256xf32, #tpu.memory_space<vmem>>, %arg2: memref<256x128xf32, #tpu.memory_space<vmem>>, %arg3: memref<1x128xf32, #tpu.memory_space<vmem>>, %arg4: memref<2x128xf32, #tpu.memory_space<vmem>>) attributes {dimension_semantics = [#tpu.dimension_semantics<parallel>], iteration_bounds = array<i64: 1>, scalar_prefetch = 0 : i64, scratch_operands = 0 : i64, tpu.core_type = #tpu.core_type<tc>, window_params = [{transform_indices = @transform_0, window_bounds = array<i64: 2, 256>}, {pipeline_mode = #tpu.pipeline_mode<synchronous>, transform_indices = @transform_1, window_bounds = array<i64: 256, 128>}, {pipeline_mode = #tpu.pipeline_mode<synchronous>, transform_indices = @transform_2, window_bounds = array<i64: 1, 128>}, {transform_indices = @transform_3, window_bounds = array<i64: 2, 128>}]} {
    %c0 = arith.constant 0 : index
    %c0_0 = arith.constant 0 : index
    %0 = vector.load %arg1[%c0, %c0_0] : memref<2x256xf32, #tpu.memory_space<vmem>>, vector<2x256xf32>
    %c0_1 = arith.constant 0 : index
    %c0_2 = arith.constant 0 : index
    %1 = vector.load %arg2[%c0_1, %c0_2] : memref<256x128xf32, #tpu.memory_space<vmem>>, vector<256x128xf32>
    %cst = arith.constant dense<0.000000e+00> : vector<2x128xf32>
    %2 = tpu.matmul %0, %1, %cst {dimension_numbers = #tpu.dot_dimension_numbers<[1], [0], [0], [1], [0, 0, 1, 1], [], []>} : vector<2x256xf32>, vector<256x128xf32>, vector<2x128xf32> -> vector<2x128xf32>
    %c0_3 = arith.constant 0 : index
    %c0_4 = arith.constant 0 : index
    %3 = vector.load %arg3[%c0_3, %c0_4] : memref<1x128xf32, #tpu.memory_space<vmem>>, vector<1x128xf32>
    %4 = vector.broadcast %3 : vector<1x128xf32> to vector<2x128xf32>
    %5 = arith.addf %2, %4 : vector<2x128xf32>
    %cst_5 = arith.constant 5.000000e-01 : f32
    %6 = vector.broadcast %cst_5 : f32 to vector<2x128xf32>
    %7 = arith.mulf %6, %5 : vector<2x128xf32>
    %8 = math.tanh %7 : vector<2x128xf32>
    %cst_6 = arith.constant 5.000000e-01 : f32
    %9 = vector.broadcast %cst_6 : f32 to vector<2x128xf32>
    %10 = arith.mulf %9, %8 : vector<2x128xf32>
    %cst_7 = arith.constant 5.000000e-01 : f32
    %11 = vector.broadcast %cst_7 : f32 to vector<2x128xf32>
    %12 = arith.addf %10, %11 : vector<2x128xf32>
    %c0_8 = arith.constant 0 : index
    %c0_9 = arith.constant 0 : index
    %13 = vector.load %arg4[%c0_8, %c0_9] : memref<2x128xf32, #tpu.memory_space<vmem>>, vector<2x128xf32>
    tpu.vector_store %arg4[%c0_8, %c0_9], %12 {strides = array<i32>} : memref<2x128xf32, #tpu.memory_space<vmem>>, vector<2x128xf32>,
    return
  }
  func.func @transform_0(%arg0: i32) -> (i32, i32) {
    %c0_i32 = arith.constant 0 : i32
    %c0_i32_0 = arith.constant 0 : i32
    return %arg0, %c0_i32 : i32, i32
  }
  func.func @transform_1(%arg0: i32) -> (i32, i32) {
    %c0_i32 = arith.constant 0 : i32
    %c0_i32_0 = arith.constant 0 : i32
    %c0_i32_1 = arith.constant 0 : i32
    return %c0_i32, %c0_i32_0 : i32, i32
  }
  func.func @transform_2(%arg0: i32) -> (i32, i32) {
    %c0_i32 = arith.constant 0 : i32
    %c0_i32_0 = arith.constant 0 : i32
    %c0_i32_1 = arith.constant 0 : i32
    return %c0_i32, %c0_i32_0 : i32, i32
  }
  func.func @transform_3(%arg0: i32) -> (i32, i32) {
    %c0_i32 = arith.constant 0 : i32
    %c0_i32_0 = arith.constant 0 : i32
    return %arg0, %c0_i32 : i32, i32
  }
}

</mosaic_0001>

<bundles_post_ra>
// kernel: tpu_custom_call.1
= control target key start
LH: loop header
LB: loop body
LE: loop exit
PB: predicated region body
PF: predicated region fallthrough
CT: control target
= control target key end

     0   :  { %8 = vsyncpa [#allocation3], 0  ;;  %s402_s0 = inlined_call_operand.hbm [shape: f32[2,256], index: 0, kind: input, shape index: {}]   ;;  %s403_s1 = inlined_call_operand.hbm [shape: f32[256,128], index: 1, kind: input, shape index: {}]   ;;  %s404_s2 = inlined_call_operand.vmem [shape: f32[1,128], index: 2, kind: input, shape index: {}]   ;;  %s405_s3 = inlined_call_operand.hbm [shape: f32[2,128], index: 3, kind: output, shape index: {}]  }
   0x1   :  { %9 = vsyncpa [#allocation6], 0 }
   0x2   :  { %10 = vsyncpa [#allocation4], 0  ;;  %s331_s12 = smov [#allocation2]   ;;  %s332_s14 = smov [#allocation5]  }
   0x3   :  { %s17_s13 = sshll.u32 %s331_s12, 4  ;;  %s26_s15 = sshll.u32 %s332_s14, 4  ;;  %s18_s13 = int_to_ptr.vmem [resolvable:$true] %s17_s13  ;;  %s356_s15 = int_to_ptr.vmem [resolvable:$true] %s26_s15 }
   0x4   :  { %s259_s18 = scalar_lea.hbm %s402_s0, 64 }
   0x5   :  { %p260_p0 = scmp.ne.s32.totalorder %s402_s0, %s259_s18  ;;  %p263_p1 = scmp.lt.u32.totalorder %s259_s18, %s402_s0 }
   0x7   :  { %p265_p2 = pnand %p263_p1, %p260_p0 }
   0x9   :  { %268 = shalt.err (!%p265_p2)
}
   0xa   :  { %s269_s23 = scalar_lea.vmem %s18_s13, 64  ;;  %p274_p4 = scmp.lt.s32.totalorder %s18_s13, %s18_s13 }
   0xb   :  { %p270_p3 = scmp.ne.s32.totalorder %s18_s13, %s269_s23  ;;  %p275_p5 = scmp.lt.s32.totalorder %s269_s23, %s269_s23 }
   0xd   :  { %p276_p6 = por %p275_p5, %p274_p4 }
   0xf   :  { %p277_p7 = pnand %p276_p6, %p270_p3 }
  0x11   :  { %280 = shalt.err (!%p277_p7)
}
  0x12   :  { %20 = dma.hbm_to_vmem [thread:$0]  %s402_s0, 64, %s18_s13, [#allocation3]  }
  0x13   :  { %s281_s28 = scalar_lea.hbm %s403_s1, 4096 }
  0x14   :  { %p282_p8 = scmp.ne.s32.totalorder %s403_s1, %s281_s28  ;;  %p285_p9 = scmp.lt.u32.totalorder %s281_s28, %s403_s1 }
  0x16   :  { %p287_p10 = pnand %p285_p9, %p282_p8 }
  0x18   :  { %290 = shalt.err (!%p287_p10)
}
  0x19   :  { %s291_s6 = scalar_lea.vmem %s356_s15, 4096  ;;  %p296_p12 = scmp.lt.s32.totalorder %s356_s15, %s356_s15 }
  0x1a   :  { %p292_p11 = scmp.ne.s32.totalorder %s356_s15, %s291_s6  ;;  %p297_p13 = scmp.lt.s32.totalorder %s291_s6, %s291_s6 }
  0x1c   :  { %p298_p0 = por %p297_p13, %p296_p12 }
  0x1e   :  { %p299_p1 = pnand %p298_p0, %p292_p11 }
  0x20   :  { %302 = shalt.err (!%p299_p1)
}
  0x21   :  { %s333_s0 = smov 128   ;;  %s334_s7 = smov 8  }
  0x22   :  { %32 = dma.hbm_to_vmem [thread:$0]  %s403_s1, 4096, %s356_s15, [#allocation6], %s333_s0, %s333_s0, %s334_s7  }
  0x23   :  { %325 = dma.done.wait [#allocation3], 64  }
  0x24   :  { %326 = vsyncadd [#allocation3], 4294967232 }
  0x25   :  { %327 = dma.done.wait [#allocation6], 4096  }
  0x26   :  { %328 = vsyncadd [#allocation6], 4294963200  ;;  %v58_v0 = vld [vmem:[#allocation5 + $0x80] sm:$0xff]  ;;  %v59_v1 = vld [vmem:[#allocation5 + $0x88] sm:$0xff]  ;;  %s335_s11 = smov [#allocation7]  }
  0x27   :  { %v42_v2 = vld [vmem:[#allocation5] sm:$0xff]  ;;  %v220_v3 = vpack.c.bf16 %v59_v1, %v58_v0  ;;  %v43_v4 = vld [vmem:[#allocation5 + $0x8] sm:$0xff]  ;;  %v60_v5 = vld [vmem:[#allocation5 + $0x90] sm:$0xff]  ;;  %s173_s12 = sshll.u32 %s335_s11, 4  ;;  %s174_s12 = int_to_ptr.vmem [resolvable:$true] %s173_s12 }
  0x28   :  { %v61_v6 = vld [vmem:[#allocation5 + $0x98] sm:$0xff]  ;;  %v222_v7 = vpack.c.bf16 %v43_v4, %v42_v2  ;;  %v44_v9 = vld [vmem:[#allocation5 + $0x10] sm:$0xff]  ;;  %v62_v11 = vld [vmem:[#allocation5 + $0xa0] sm:$0xff]  ;;  %s303_s13 = scalar_lea.vmem %s174_s12, 32  ;;  %p308_p3 = scmp.lt.s32.totalorder %s174_s12, %s174_s12 }
  0x29   :  { %v224_v8 = vpack.c.bf16 %v61_v6, %v60_v5  ;;  %v45_v10 = vld [vmem:[#allocation5 + $0x18] sm:$0xff]  ;;  %221 = vmatprep.subr.bf16.mxu0 %v220_v3  ;;  %v63_v12 = vld [vmem:[#allocation5 + $0xa8] sm:$0xff]  ;;  %v46_v15 = vld [vmem:[#allocation5 + $0x20] sm:$0xff]  ;;  %p304_p2 = scmp.ne.s32.totalorder %s174_s12, %s303_s13  ;;  %p309_p4 = scmp.lt.s32.totalorder %s303_s13, %s303_s13 }
  0x2a   :  { %223 = vmatpush3.bf16.msra.mxu0 %v222_v7  ;;  %v226_v13 = vpack.c.bf16 %v45_v10, %v44_v9  ;;  %v228_v14 = vpack.c.bf16 %v63_v12, %v62_v11  ;;  %v47_v16 = vld [vmem:[#allocation5 + $0x28] sm:$0xff]  ;;  %v64_v17 = vld [vmem:[#allocation5 + $0xb0] sm:$0xff]  ;;  %v65_v18 = vld [vmem:[#allocation5 + $0xb8] sm:$0xff] }
  0x2b   :  { %225 = vmatprep.subr.bf16.mxu0 %v224_v8  ;;  %v230_v19 = vpack.c.bf16 %v47_v16, %v46_v15  ;;  %v232_v20 = vpack.c.bf16 %v65_v18, %v64_v17  ;;  %v48_v21 = vld [vmem:[#allocation5 + $0x30] sm:$0xff]  ;;  %v49_v22 = vld [vmem:[#allocation5 + $0x38] sm:$0xff]  ;;  %v66_v23 = vld [vmem:[#allocation5 + $0xc0] sm:$0xff]  ;;  %p310_p5 = por %p309_p4, %p308_p3 }
  0x2c   :  { %v67_v24 = vld [vmem:[#allocation5 + $0xc8] sm:$0xff]  ;;  %v184_v25 = vld.sshfl [vmem:[#allocation2] sm:$0x33 pattern:$0x76325410]  ;;  %v234_v27 = vpack.c.bf16 %v49_v22, %v48_v21  ;;  %v50_v29 = vld [vmem:[#allocation5 + $0x40] sm:$0xff] }
  0x2d   :  { %v89_v26 = vcombine.high %v184_v25, %v184_v25  ;;  %v236_v28 = vpack.c.bf16 %v67_v24, %v66_v23  ;;  %v51_v30 = vld [vmem:[#allocation5 + $0x48] sm:$0xff]  ;;  %v68_v31 = vld [vmem:[#allocation5 + $0xd0] sm:$0xff]  ;;  %v69_v32 = vld [vmem:[#allocation5 + $0xd8] sm:$0xff]  ;;  %p311_p6 = pnand %p310_p5, %p304_p2 }
  0x2e   :  { %227 = vmatpush3.bf16.msra.mxu0 %v226_v13  ;;  %v238_v33 = vpack.c.bf16 %v51_v30, %v50_v29  ;;  %v240_v34 = vpack.c.bf16 %v69_v32, %v68_v31  ;;  %v52_v35 = vld [vmem:[#allocation5 + $0x50] sm:$0xff]  ;;  %v53_v36 = vld [vmem:[#allocation5 + $0x58] sm:$0xff]  ;;  %v70_v37 = vld [vmem:[#allocation5 + $0xe0] sm:$0xff] }
  0x2f   :  { %229 = vmatprep.subr.bf16.mxu0 %v228_v14  ;;  %156 = vmatprep.mubr.f32.mxu0 %v89_v26  ;;  %v71_v38 = vld [vmem:[#allocation5 + $0xe8] sm:$0xff]  ;;  %v242_v39 = vpack.c.bf16 %v53_v36, %v52_v35  ;;  %v54_v41 = vld [vmem:[#allocation5 + $0x60] sm:$0xff]  ;;  %v72_v43 = vld [vmem:[#allocation5 + $0xf0] sm:$0xff] }
  0x30   :  { %v244_v40 = vpack.c.bf16 %v71_v38, %v70_v37  ;;  %v55_v42 = vld [vmem:[#allocation5 + $0x68] sm:$0xff]  ;;  %v73_v44 = vld [vmem:[#allocation5 + $0xf8] sm:$0xff]  ;;  %v56_v47 = vld [vmem:[#allocation5 + $0x70] sm:$0xff] }
  0x31   :  { %v246_v45 = vpack.c.bf16 %v55_v42, %v54_v41  ;;  %v248_v46 = vpack.c.bf16 %v73_v44, %v72_v43  ;;  %v57_v48 = vld [vmem:[#allocation5 + $0x78] sm:$0xff] }
  0x32   :  { %231 = vmatpush3.bf16.msra.mxu0 %v230_v19  ;;  %v250_v49 = vpack.c.bf16 %v57_v48, %v56_v47  ;;  %v183_v51 = vld [vmem:[%s404_s2] ss:$0 sm:$0xff] }
  0x33   :  { %233 = vmatprep.subr.bf16.mxu0 %v232_v20 }
  0x36   :  { %235 = vmatpush3.bf16.msra.mxu0 %v234_v27 }
  0x37   :  { %237 = vmatprep.subr.bf16.mxu0 %v236_v28 }
  0x3a   :  { %239 = vmatpush3.bf16.msra.mxu0 %v238_v33 }
  0x3b   :  { %241 = vmatprep.subr.bf16.mxu0 %v240_v34 }
  0x3e   :  { %243 = vmatpush3.bf16.msra.mxu0 %v242_v39 }
  0x3f   :  { %245 = vmatprep.subr.bf16.mxu0 %v244_v40 }
  0x42   :  { %247 = vmatpush3.bf16.msra.mxu0 %v246_v45 }
  0x43   :  { %249 = vmatprep.subr.bf16.mxu0 %v248_v46 }
  0x46   :  { %251 = vmatpush3.bf16.msra.mxu0 %v250_v49 }
  0x49   :  { %157 = vmatmul.mubr.f32.vlgmr.msra.gmra.mrb[0].mxu0 %v184_v25 }
 0x11c   :  { %v217_v50 = vpop.f32.mrb[0].mxu0 }
 0x11d   :  { %v218_v52 = vpop.f32.mrb[1].mxu0 }
 0x11e   :  { %v219_v53 = vadd.f32 %v218_v52, %v217_v50 }
 0x120   :  { %v159_v54 = vadd.f32 %v219_v53, %v183_v51 }
 0x122   :  { %v162_v55 = vmul.f32 0.5, %v159_v54 }
 0x124   :  { %257 = vtanh.f32 %v162_v55 }
 0x12e   :  { %v258_v56 = vpop.eup %257 }
 0x12f   :  { %v164_v57 = vmul.f32 0.5, %v258_v56 }
 0x131   :  { %v165_v58 = vadd.f32 0.5, %v164_v57 }
 0x133   :  { %166 = vst [vmem:[#allocation7] sm:$0x3] %v165_v58 }
 0x134   :  { %314 = shalt.err (!%p311_p6)
}
 0x135   :  { %s315_s15 = scalar_lea.hbm %s405_s3, 32 }
 0x136   :  { %p316_p7 = scmp.ne.s32.totalorder %s405_s3, %s315_s15  ;;  %p319_p8 = scmp.lt.u32.totalorder %s315_s15, %s405_s3 }
 0x138   :  { %p321_p9 = pnand %p319_p8, %p316_p7 }
 0x13a   :  { %324 = shalt.err (!%p321_p9)
}
 0x13b   :  { %176 = dma.vmem_to_hbm [thread:$0]  %s174_s12, 32, %s405_s3, [#allocation4]  }
 0x13c   :  { %329 = dma.done.wait [#allocation4], 32  }
 0x13d   :  { %330 = vsyncadd [#allocation4], 4294967264 }
 0x13e   :  { %180 = vsyncpa [#allocation3], 1 }
 0x13f   :  { %181 = vsyncpa [#allocation6], 1 }
 0x140   :  { %182 = vsyncpa [#allocation4], 1 }

</bundles_post_ra>
